<compile_context>
chip_gen: v6e
topology: v6e:2x2x1
jax: 0.10.0
libtpu: 0.0.40
codegen_flags: <defaults>
</compile_context>

<pallas_src>
import jax
import jax.numpy as jnp
from jax.experimental import pallas as pl
from jax.experimental.pallas import tpu as pltpu

HIDDEN = 50            # logical hidden width (nn.Linear(input, 50))
NEG_SLOPE = 0.01       # F.leaky_relu default negative_slope

LANE = 128
SUBLANE = 8
HID_PAD = 128          # hidden padded to full lane width
OUT_PAD = 128          # output lanes padded so stores are unmasked
B_TILE = 128           # batch rows per grid step


def _round_up(n, m):
    return (n + m - 1) // m * m


def _leaky_relu(x):
    return jnp.where(x > 0, x, NEG_SLOPE * x)


def dqn_kernel(x_ref, w1_ref, b1_ref, w2_ref, b2_ref, w3_ref, b3_ref, o_ref):
    x = x_ref[...]
    # layer 1: Linear(input, 50) + leaky_relu (padded to HID_PAD lanes)
    h1 = jnp.dot(x, w1_ref[...], preferred_element_type=jnp.float32) + b1_ref[...]
    h1 = _leaky_relu(h1)
    # layer 2: Linear(50, 50) + leaky_relu
    h2 = jnp.dot(h1, w2_ref[...], preferred_element_type=jnp.float32) + b2_ref[...]
    h2 = _leaky_relu(h2)
    # head: Linear(50, num_actions), no activation.  Full 128-lane store.
    out = jnp.dot(h2, w3_ref[...], preferred_element_type=jnp.float32) + b3_ref[...]
    o_ref[...] = out.astype(o_ref.dtype)


def _pad2(a, rows, cols):
    """Zero-pad a 2-D array up to (rows, cols)."""
    return jnp.zeros((rows, cols), a.dtype).at[: a.shape[0], : a.shape[1]].set(a)


def pad_params(params):
    """Pad logical params to (8,128)-aligned, lane-dense shapes (done once)."""
    in_size = params["w1"].shape[0]
    in_pad = _round_up(in_size, SUBLANE)
    return {
        "w1": _pad2(params["w1"], in_pad, HID_PAD),
        "b1": _pad2(params["b1"], 1, HID_PAD),
        "w2": _pad2(params["w2"], HID_PAD, HID_PAD),
        "b2": _pad2(params["b2"], 1, HID_PAD),
        "w3": _pad2(params["w3"], HID_PAD, OUT_PAD),
        "b3": _pad2(params["b3"], 1, OUT_PAD),
    }


def dqn_forward(x, padded, num_actions, b_tile=B_TILE):
    """x: (B, input_size) f32.  padded: dict from pad_params.  Returns (B, num_actions)."""
    B, in_size = x.shape
    w1, b1 = padded["w1"], padded["b1"]
    w2, b2 = padded["w2"], padded["b2"]
    w3, b3 = padded["w3"], padded["b3"]
    in_pad = w1.shape[0]

    # Pad batch to a multiple of the tile and the feature dim to the padded K.
    b_pad = _round_up(max(B, 1), b_tile)
    x_pad = jnp.zeros((b_pad, in_pad), x.dtype).at[:B, :in_size].set(x)

    grid = (b_pad // b_tile,)

    out = pl.pallas_call(
        dqn_kernel,
        out_shape=jax.ShapeDtypeStruct((b_pad, OUT_PAD), jnp.float32),
        grid=grid,
        in_specs=[
            # activations: one batch tile per grid step (double-buffered DMA)
            pl.BlockSpec((b_tile, in_pad), lambda i: (i, 0)),
            # weights/biases: same block every step -> stay VMEM-resident
            pl.BlockSpec((in_pad, HID_PAD), lambda i: (0, 0)),
            pl.BlockSpec((1, HID_PAD), lambda i: (0, 0)),
            pl.BlockSpec((HID_PAD, HID_PAD), lambda i: (0, 0)),
            pl.BlockSpec((1, HID_PAD), lambda i: (0, 0)),
            pl.BlockSpec((HID_PAD, OUT_PAD), lambda i: (0, 0)),
            pl.BlockSpec((1, OUT_PAD), lambda i: (0, 0)),
        ],
        out_specs=pl.BlockSpec((b_tile, OUT_PAD), lambda i: (i, 0)),
        compiler_params=pltpu.CompilerParams(
            dimension_semantics=("parallel",)  # splits batch across TCs on v7x
        ),
    )(x_pad, w1, b1, w2, b2, w3, b3)

    # Slice back to the logical batch / action dims.
    return out[:B, :num_actions]


def init_params(key, input_size, num_actions):
    """Deterministic init mimicking nn.Linear's uniform(-1/sqrt(fan_in), 1/sqrt(fan_in))."""
    def linear(key, fan_in, fan_out):
        kw, kb = jax.random.split(key)
        bound = 1.0 / jnp.sqrt(jnp.float32(fan_in))
        w = jax.random.uniform(kw, (fan_in, fan_out), jnp.float32, -bound, bound)
        b = jax.random.uniform(kb, (1, fan_out), jnp.float32, -bound, bound)
        return w, b

    k1, k2, k3 = jax.random.split(key, 3)
    w1, b1 = linear(k1, input_size, HIDDEN)
    w2, b2 = linear(k2, HIDDEN, HIDDEN)
    w3, b3 = linear(k3, HIDDEN, num_actions)
    return {"w1": w1, "b1": b1, "w2": w2, "b2": b2, "w3": w3, "b3": b3}


def dqn_reference(x, p):
    h1 = _leaky_relu(x @ p["w1"] + p["b1"])
    h2 = _leaky_relu(h1 @ p["w2"] + p["b2"])
    return h2 @ p["w3"] + p["b3"]


if __name__ == "__main__":
    input_size = 16    # flattened gridworld observation
    num_actions = 4
    batch = 200        # exercises 2 grid steps plus batch-tail padding

    key = jax.random.PRNGKey(0)
    kp, kx = jax.random.split(key)
    params = init_params(kp, input_size, num_actions)
    padded = pad_params(params)                      # pad once, reuse every call
    x = jax.random.normal(kx, (batch, input_size), jnp.float32)

    out = dqn_forward(x, padded, num_actions)
    out = jax.block_until_ready(out)

    ref = dqn_reference(x, params)
    assert out.shape == (batch, num_actions)
    assert jnp.allclose(out, ref, atol=1e-5, rtol=1e-5), "mismatch vs JAX reference"

    print("KERNEL_OK")
</pallas_src>

<mosaic_0001>
module attributes {stable_mosaic.version = 11 : i64} {
  func.func @dqn_kernel(%arg0: i32, %arg1: memref<128x16xf32, #tpu.memory_space<vmem>>, %arg2: memref<16x128xf32, #tpu.memory_space<vmem>>, %arg3: memref<1x128xf32, #tpu.memory_space<vmem>>, %arg4: memref<128x128xf32, #tpu.memory_space<vmem>>, %arg5: memref<1x128xf32, #tpu.memory_space<vmem>>, %arg6: memref<128x128xf32, #tpu.memory_space<vmem>>, %arg7: memref<1x128xf32, #tpu.memory_space<vmem>>, %arg8: memref<128x128xf32, #tpu.memory_space<vmem>>) attributes {dimension_semantics = [#tpu.dimension_semantics<parallel>], iteration_bounds = array<i64: 2>, scalar_prefetch = 0 : i64, scratch_operands = 0 : i64, tpu.core_type = #tpu.core_type<tc>, window_params = [{transform_indices = @transform_0, window_bounds = array<i64: 128, 16>}, {pipeline_mode = #tpu.pipeline_mode<synchronous>, transform_indices = @transform_1, window_bounds = array<i64: 16, 128>}, {pipeline_mode = #tpu.pipeline_mode<synchronous>, transform_indices = @transform_2, window_bounds = array<i64: 1, 128>}, {pipeline_mode = #tpu.pipeline_mode<synchronous>, transform_indices = @transform_3, window_bounds = array<i64: 128, 128>}, {pipeline_mode = #tpu.pipeline_mode<synchronous>, transform_indices = @transform_4, window_bounds = array<i64: 1, 128>}, {pipeline_mode = #tpu.pipeline_mode<synchronous>, transform_indices = @transform_5, window_bounds = array<i64: 128, 128>}, {pipeline_mode = #tpu.pipeline_mode<synchronous>, transform_indices = @transform_6, window_bounds = array<i64: 1, 128>}, {transform_indices = @transform_7, window_bounds = array<i64: 128, 128>}]} {
    %c0 = arith.constant 0 : index
    %c0_0 = arith.constant 0 : index
    %0 = vector.load %arg1[%c0, %c0_0] : memref<128x16xf32, #tpu.memory_space<vmem>>, vector<128x16xf32>
    %c0_1 = arith.constant 0 : index
    %c0_2 = arith.constant 0 : index
    %1 = vector.load %arg2[%c0_1, %c0_2] : memref<16x128xf32, #tpu.memory_space<vmem>>, vector<16x128xf32>
    %cst = arith.constant dense<0.000000e+00> : vector<128x128xf32>
    %2 = tpu.matmul %0, %1, %cst {dimension_numbers = #tpu.dot_dimension_numbers<[1], [0], [0], [1], [0, 0, 1, 1], [], []>} : vector<128x16xf32>, vector<16x128xf32>, vector<128x128xf32> -> vector<128x128xf32>
    %c0_3 = arith.constant 0 : index
    %c0_4 = arith.constant 0 : index
    %3 = vector.load %arg3[%c0_3, %c0_4] : memref<1x128xf32, #tpu.memory_space<vmem>>, vector<1x128xf32>
    %4 = vector.broadcast %3 : vector<1x128xf32> to vector<128x128xf32>
    %5 = arith.addf %2, %4 : vector<128x128xf32>
    %cst_5 = arith.constant 0.000000e+00 : f32
    %6 = vector.broadcast %cst_5 : f32 to vector<128x128xf32>
    %7 = arith.cmpf ogt, %5, %6 : vector<128x128xf32>
    %cst_6 = arith.constant 0.00999999977 : f32
    %8 = vector.broadcast %cst_6 : f32 to vector<128x128xf32>
    %9 = arith.mulf %8, %5 : vector<128x128xf32>
    %10 = arith.select %7, %5, %9 : vector<128x128xi1>, vector<128x128xf32>
    %c0_7 = arith.constant 0 : index
    %c0_8 = arith.constant 0 : index
    %11 = vector.load %arg4[%c0_7, %c0_8] : memref<128x128xf32, #tpu.memory_space<vmem>>, vector<128x128xf32>
    %cst_9 = arith.constant dense<0.000000e+00> : vector<128x128xf32>
    %12 = tpu.matmul %10, %11, %cst_9 {dimension_numbers = #tpu.dot_dimension_numbers<[1], [0], [0], [1], [0, 0, 1, 1], [], []>} : vector<128x128xf32>, vector<128x128xf32>, vector<128x128xf32> -> vector<128x128xf32>
    %c0_10 = arith.constant 0 : index
    %c0_11 = arith.constant 0 : index
    %13 = vector.load %arg5[%c0_10, %c0_11] : memref<1x128xf32, #tpu.memory_space<vmem>>, vector<1x128xf32>
    %14 = vector.broadcast %13 : vector<1x128xf32> to vector<128x128xf32>
    %15 = arith.addf %12, %14 : vector<128x128xf32>
    %cst_12 = arith.constant 0.000000e+00 : f32
    %16 = vector.broadcast %cst_12 : f32 to vector<128x128xf32>
    %17 = arith.cmpf ogt, %15, %16 : vector<128x128xf32>
    %cst_13 = arith.constant 0.00999999977 : f32
    %18 = vector.broadcast %cst_13 : f32 to vector<128x128xf32>
    %19 = arith.mulf %18, %15 : vector<128x128xf32>
    %20 = arith.select %17, %15, %19 : vector<128x128xi1>, vector<128x128xf32>
    %c0_14 = arith.constant 0 : index
    %c0_15 = arith.constant 0 : index
    %21 = vector.load %arg6[%c0_14, %c0_15] : memref<128x128xf32, #tpu.memory_space<vmem>>, vector<128x128xf32>
    %cst_16 = arith.constant dense<0.000000e+00> : vector<128x128xf32>
    %22 = tpu.matmul %20, %21, %cst_16 {dimension_numbers = #tpu.dot_dimension_numbers<[1], [0], [0], [1], [0, 0, 1, 1], [], []>} : vector<128x128xf32>, vector<128x128xf32>, vector<128x128xf32> -> vector<128x128xf32>
    %c0_17 = arith.constant 0 : index
    %c0_18 = arith.constant 0 : index
    %23 = vector.load %arg7[%c0_17, %c0_18] : memref<1x128xf32, #tpu.memory_space<vmem>>, vector<1x128xf32>
    %24 = vector.broadcast %23 : vector<1x128xf32> to vector<128x128xf32>
    %25 = arith.addf %22, %24 : vector<128x128xf32>
    %c0_19 = arith.constant 0 : index
    %c0_20 = arith.constant 0 : index
    %26 = vector.load %arg8[%c0_19, %c0_20] : memref<128x128xf32, #tpu.memory_space<vmem>>, vector<128x128xf32>
    tpu.vector_store %arg8[%c0_19, %c0_20], %25 {strides = array<i32>} : memref<128x128xf32, #tpu.memory_space<vmem>>, vector<128x128xf32>,
    return
  }
  func.func @transform_0(%arg0: i32) -> (i32, i32) {
    %c0_i32 = arith.constant 0 : i32
    %c0_i32_0 = arith.constant 0 : i32
    return %arg0, %c0_i32 : i32, i32
  }
  func.func @transform_1(%arg0: i32) -> (i32, i32) {
    %c0_i32 = arith.constant 0 : i32
    %c0_i32_0 = arith.constant 0 : i32
    %c0_i32_1 = arith.constant 0 : i32
    return %c0_i32, %c0_i32_0 : i32, i32
  }
  func.func @transform_2(%arg0: i32) -> (i32, i32) {
    %c0_i32 = arith.constant 0 : i32
    %c0_i32_0 = arith.constant 0 : i32
    %c0_i32_1 = arith.constant 0 : i32
    return %c0_i32, %c0_i32_0 : i32, i32
  }
  func.func @transform_3(%arg0: i32) -> (i32, i32) {
    %c0_i32 = arith.constant 0 : i32
    %c0_i32_0 = arith.constant 0 : i32
    %c0_i32_1 = arith.constant 0 : i32
    return %c0_i32, %c0_i32_0 : i32, i32
  }
  func.func @transform_4(%arg0: i32) -> (i32, i32) {
    %c0_i32 = arith.constant 0 : i32
    %c0_i32_0 = arith.constant 0 : i32
    %c0_i32_1 = arith.constant 0 : i32
    return %c0_i32, %c0_i32_0 : i32, i32
  }
  func.func @transform_5(%arg0: i32) -> (i32, i32) {
    %c0_i32 = arith.constant 0 : i32
    %c0_i32_0 = arith.constant 0 : i32
    %c0_i32_1 = arith.constant 0 : i32
    return %c0_i32, %c0_i32_0 : i32, i32
  }
  func.func @transform_6(%arg0: i32) -> (i32, i32) {
    %c0_i32 = arith.constant 0 : i32
    %c0_i32_0 = arith.constant 0 : i32
    %c0_i32_1 = arith.constant 0 : i32
    return %c0_i32, %c0_i32_0 : i32, i32
  }
  func.func @transform_7(%arg0: i32) -> (i32, i32) {
    %c0_i32 = arith.constant 0 : i32
    %c0_i32_0 = arith.constant 0 : i32
    return %arg0, %c0_i32 : i32, i32
  }
}

</mosaic_0001>

<bundles_post_ra>
// kernel: tpu_custom_call.1
= control target key start
LH: loop header
LB: loop body
LE: loop exit
PB: predicated region body
PF: predicated region fallthrough
CT: control target
= control target key end

     0   :  { %12 = vsyncpa [#allocation3], 0  ;;  %s1728_s0 = inlined_call_operand.vmem [shape: f32[256,16], index: 0, kind: input, shape index: {}]   ;;  %s1729_s1 = inlined_call_operand.vmem [shape: f32[16,128], index: 1, kind: input, shape index: {}]   ;;  %s1730_s2 = inlined_call_operand.vmem [shape: f32[1,128], index: 2, kind: input, shape index: {}]   ;;  %s1731_s3 = inlined_call_operand.vmem [shape: f32[128,128], index: 3, kind: input, shape index: {}]   ;;  %s1732_s4 = inlined_call_operand.vmem [shape: f32[1,128], index: 4, kind: input, shape index: {}]   ;;  %s1733_s5 = inlined_call_operand.vmem [shape: f32[128,128], index: 5, kind: input, shape index: {}]   ;;  %s1734_s6 = inlined_call_operand.vmem [shape: f32[1,128], index: 6, kind: input, shape index: {}]   ;;  %s1735_s7 = inlined_call_operand.hbm [shape: f32[256,128], index: 7, kind: output, shape index: {}]  }
   0x1   :  { %14 = vsyncpa [#allocation3 + $0x1], 0  ;;  %s1423_s24 = smov 0   ;;  %s1425_s25 = smov 0  }
   0x2   :  { %s1427_s26 = smov 0   ;;  %s1429_s27 = smov 0  }
   0x3 LB: > { %s1444_s28 = sadd.s32 4294967295, %s1378_s27   ;;  %s1023_s29 = sadd.s32 4294967294, %s1378_s27   ;;  %s1378_s27 = sphi %s1429_s27, %s1741_s27   ;;  %s1374_s26 = sphi %s1427_s26, %s1740_s26   ;;  %s1370_s25 = sphi %s1425_s25, %s1739_s25   ;;  %s1366_s24 = sphi %s1423_s24, %s1738_s24  }
   0x4   : > { %s1448_s30 = sadd.s32 1, %s1378_s27   ;;  %s179_s8 = sadd.s32 1, %s1374_s26 }
   0x5   : > { %s176_s9 = ssub.s32 %s1378_s27, %s1448_s30  ;;  %p189_p0 = scmp.ne.s32.totalorder %s1374_s26, %s1370_s25 }
   0x6   : > { %p177_p1 = scmp.eq.s32.totalorder %s176_s9, 0  ;;  %p190_p2 = scmp.eq.s32.totalorder %s1444_s28, 1 }
   0x7   : > { %p195_p3 = scmp.ne.s32.totalorder %s1370_s25, %s1366_s24  ;;  %p196_p4 = scmp.eq.s32.totalorder %s1023_s29, 1 }
   0x8   : > { %s1459_s10 = scalar_select %p177_p1, %s1374_s26, %s179_s8  }
   0x9   : > { %p1461_p5 = por %p190_p2, %p189_p0  ;;  %p1465_p6 = por %p196_p4, %p195_p3 }
   0xa   : > { %p1026_p7 = scmp.ge.s32.totalorder %s1378_s27, 1  ;;  %p241_p8 = scmp.lt.s32.totalorder %s1378_s27, 3 }
   0xc   : > { %p242_p9 = pnand %p1026_p7, %p241_p8 }
   0xd   : > { %s1028_s17 = sshll.u32 (!%p242_p9), %s1444_s28, 4  ;;  %s270_s21 = sand.u32 (!%p242_p9), 1, %s1370_s25  }
   0xe   : > { %245 = sbr.rel (%p242_p9) target bundleno = 666 (0x29a), region = 48  ;;  %p274_p10 = scmp.lt.s32.totalorder (!%p242_p9), %s1028_s17, 31 }
   0xf   : > { %s1027_s22 = sshll.u32 (!%p242_p9), %s270_s21, 7  ;;  %s1054_s8 = sshll.u32 (!%p242_p9), %s1444_s28, 11 }
  0x10   : > { %s1680_s16 = scalar_lea.hbm (!%p242_p9), %s1735_s7, %s1054_s8  ;;  %s1688_s28 = scalar_lea.sflag (!%p242_p9), [#allocation3], %s270_s21 }
  0x13   : > { %v297_v0 = vld [vmem:[%s1729_s1 + $0x8] sm:$0xff]  ;;  %v296_v1 = vld [vmem:[%s1729_s1] sm:$0xff]  ;;  %v562_v2 = vld [vmem:[%s1731_s3 + $0x78] sm:$0xff]  ;;  %s1743_s17 = smov (!%p274_p10, %s1028_s17), 31  ;;  %vm305_vm0 = vcmask 130048  }
  0x14   : > { %1137 = vmatprep.subr.mxu0 %v297_v0  ;;  %1165 = vmatprep.subr.mxu1 %v562_v2  ;;  %v561_v3 = vld [vmem:[%s1731_s3 + $0x70] sm:$0xff]  ;;  %v560_v4 = vld [vmem:[%s1731_s3 + $0x68] sm:$0xff]  ;;  %v559_v5 = vld [vmem:[%s1731_s3 + $0x60] sm:$0xff]  ;;  %s1029_s9 = sshll.u32 %s1743_s17, 3  ;;  %s1380_s17 = smov [#allocation2]  }
  0x15   : > { %1138 = vmatpush3.msra.mxu0 %v297_v0  ;;  %1166 = vmatpush3.msra.mxu1 %v562_v2  ;;  %s1493_s15 = scalar_lea.vmem %s1728_s0, %s1029_s9  ;;  %v558_v6 = vld [vmem:[%s1731_s3 + $0x58] sm:$0xff]  ;;  %v557_v10 = vld [vmem:[%s1731_s3 + $0x50] sm:$0xff]  ;;  %v556_v12 = vld [vmem:[%s1731_s3 + $0x48] sm:$0xff]  ;;  %s1322_s19 = sshll.u32 %s1380_s17, 4  ;;  %s1323_s19 = int_to_ptr.vmem [resolvable:$false] %s1322_s19 }
  0x16   : > { %1139 = vmatprep.subr.mxu0 %v296_v1  ;;  %1167 = vmatprep.subr.mxu1 %v561_v3  ;;  %v280_v7 = vld [vmem:[%s1493_s15] sm:$0xff]  ;;  %v281_v8 = vld [vmem:[%s1493_s15 + $0x8] sm:$0xff]  ;;  %v282_v9 = vld [vmem:[%s1493_s15 + $0x10] sm:$0xff]  ;;  %s1324_s20 = scalar_lea.vmem %s1323_s19, 4096 }
  0x17   : > { %1140 = vmatpush3.msra.mxu0 %v296_v1  ;;  %1168 = vmatpush3.msra.mxu1 %v561_v3  ;;  %v283_v11 = vld [vmem:[%s1493_s15 + $0x18] sm:$0xff]  ;;  %v284_v13 = vld [vmem:[%s1493_s15 + $0x20] sm:$0xff]  ;;  %v285_v15 = vld [vmem:[%s1493_s15 + $0x28] sm:$0xff] }
  0x18   : > { %1169 = vmatprep.subr.mxu1 %v560_v4  ;;  %1141 = vmatprep.mubr.msk.f32.mxu0 %vm305_vm0, %v280_v7  ;;  %v555_v14 = vld [vmem:[%s1731_s3 + $0x40] sm:$0xff]  ;;  %v554_v16 = vld [vmem:[%s1731_s3 + $0x38] sm:$0xff]  ;;  %v286_v17 = vld [vmem:[%s1493_s15 + $0x30] sm:$0xff] }
  0x19   : > { %1170 = vmatpush3.msra.mxu1 %v560_v4  ;;  %1142 = vmatmul.mubr.msk.f32.vlgmr.msra.gmra.mxu0 %vm305_vm0, %v281_v8  ;;  %v553_v18 = vld [vmem:[%s1731_s3 + $0x30] sm:$0xff]  ;;  %v287_v19 = vld [vmem:[%s1493_s15 + $0x38] sm:$0xff]  ;;  %v552_v20 = vld [vmem:[%s1731_s3 + $0x28] sm:$0xff] }
  0x1a   : > { %1171 = vmatprep.subr.mxu1 %v559_v5  ;;  %1144 = vmatprep.mubr.msk.f32.mxu0 %vm305_vm0, %v282_v9  ;;  %v288_v21 = vld [vmem:[%s1493_s15 + $0x40] sm:$0xff]  ;;  %v289_v23 = vld [vmem:[%s1493_s15 + $0x48] sm:$0xff]  ;;  %v290_v24 = vld [vmem:[%s1493_s15 + $0x50] sm:$0xff] }
  0x1b   : > { %1172 = vmatpush3.msra.mxu1 %v559_v5  ;;  %v551_v22 = vld [vmem:[%s1731_s3 + $0x20] sm:$0xff]  ;;  %v291_v25 = vld [vmem:[%s1493_s15 + $0x58] sm:$0xff]  ;;  %v293_v27 = vld [vmem:[%s1493_s15 + $0x68] sm:$0xff] }
  0x1c   : > { %1173 = vmatprep.subr.mxu1 %v558_v6  ;;  %v292_v26 = vld [vmem:[%s1493_s15 + $0x60] sm:$0xff]  ;;  %v294_v28 = vld [vmem:[%s1493_s15 + $0x70] sm:$0xff]  ;;  %v295_v29 = vld [vmem:[%s1493_s15 + $0x78] sm:$0xff]  ;;  %s1659_s15 = scalar_lea.vmem [#allocation2], %s1027_s22 }
  0x1d   : > { %1174 = vmatpush3.msra.mxu1 %v558_v6  ;;  %1145 = vmatmul.mubr.msk.f32.gmra.mxu0 %vm305_vm0, %v283_v11  ;;  %v550_v30 = vld [vmem:[%s1731_s3 + $0x18] sm:$0xff]  ;;  %v549_v31 = vld [vmem:[%s1731_s3 + $0x10] sm:$0xff]  ;;  %v548_v32 = vld [vmem:[%s1731_s3 + $0x8] sm:$0xff]  ;;  %s961_s9 = sshll.u32 %s1659_s15, 4  ;;  %s1682_s9 = int_to_ptr.vmem [resolvable:$true] %s961_s9 }
  0x1e   : > { %1175 = vmatprep.subr.mxu1 %v557_v10  ;;  %1147 = vmatprep.mubr.msk.f32.mxu0 %vm305_vm0, %v284_v13  ;;  %v547_v33 = vld [vmem:[%s1731_s3] sm:$0xff]  ;;  %v778_v34 = vld [vmem:[%s1733_s5 + $0x78] sm:$0xff]  ;;  %v777_v35 = vld [vmem:[%s1733_s5 + $0x70] sm:$0xff]  ;;  %s1318_s18 = scalar_lea.vmem %s1682_s9, 2048  ;;  %p1325_p0 = scmp.lt.s32.totalorder %s1682_s9, %s1323_s19 }
  0x1f   : > { %1176 = vmatpush3.msra.mxu1 %v557_v10  ;;  %1221 = vmatprep.subr.mxu0 %v778_v34  ;;  %v776_v36 = vld [vmem:[%s1733_s5 + $0x68] sm:$0xff]  ;;  %v775_v37 = vld [vmem:[%s1733_s5 + $0x60] sm:$0xff]  ;;  %v774_v38 = vld [vmem:[%s1733_s5 + $0x58] sm:$0xff]  ;;  %p1319_p11 = scmp.ne.s32.totalorder %s1682_s9, %s1318_s18  ;;  %p1326_p1 = scmp.lt.s32.totalorder %s1324_s20, %s1318_s18 }
  0x20   : > { %1177 = vmatprep.subr.mxu1 %v556_v12  ;;  %1222 = vmatpush3.msra.mxu0 %v778_v34  ;;  %v773_v39 = vld [vmem:[%s1733_s5 + $0x50] sm:$0xff]  ;;  %v772_v40 = vld [vmem:[%s1733_s5 + $0x48] sm:$0xff]  ;;  %v771_v41 = vld [vmem:[%s1733_s5 + $0x40] sm:$0xff] }
  0x21   : > { %1178 = vmatpush3.msra.mxu1 %v556_v12  ;;  %1148 = vmatmul.mubr.msk.f32.gmra.mxu0 %vm305_vm0, %v285_v15  ;;  %v770_v42 = vld [vmem:[%s1733_s5 + $0x38] sm:$0xff]  ;;  %v769_v43 = vld [vmem:[%s1733_s5 + $0x30] sm:$0xff]  ;;  %v768_v44 = vld [vmem:[%s1733_s5 + $0x28] sm:$0xff]  ;;  %p1320_p12 = pnand %p1319_p11, %p1461_p5  ;;  %p1327_p2 = por %p1326_p1, %p1325_p0 }
  0x22   : > { %1179 = vmatprep.subr.mxu1 %v555_v14  ;;  %1150 = vmatprep.mubr.msk.f32.mxu0 %vm305_vm0, %v286_v17  ;;  %v767_v45 = vld [vmem:[%s1733_s5 + $0x20] sm:$0xff] }
  0x23   : > { %1180 = vmatpush3.msra.mxu1 %v555_v14  ;;  %1223 = vmatprep.subr.mxu0 %v777_v35  ;;  %v1602_v46 = vld [vmem:[%s1730_s2] ss:$0 sm:$0xff]  ;;  %p1321_p13 = pneg %p1320_p12 }
  0x24   : > { %1181 = vmatprep.subr.mxu1 %v554_v16  ;;  %1224 = vmatpush3.msra.mxu0 %v777_v35 }
  0x25   : > { %1182 = vmatpush3.msra.mxu1 %v554_v16  ;;  %1151 = vmatmul.mubr.msk.f32.gmra.mxu0 %vm305_vm0, %v287_v19  ;;  %p1328_p3 = pnand %p1327_p2, %p1321_p13 }
  0x26   : > { %1183 = vmatprep.subr.mxu1 %v553_v18  ;;  %1153 = vmatprep.mubr.msk.f32.mxu0 %vm305_vm0, %v288_v21 }
  0x27   : > { %1184 = vmatpush3.msra.mxu1 %v553_v18  ;;  %1225 = vmatprep.subr.mxu0 %v776_v36 }
  0x28   : > { %1185 = vmatprep.subr.mxu1 %v552_v20  ;;  %1226 = vmatpush3.msra.mxu0 %v776_v36 }
  0x29   : > { %1186 = vmatpush3.msra.mxu1 %v552_v20  ;;  %1154 = vmatmul.mubr.msk.f32.gmra.mxu0 %vm305_vm0, %v289_v23 }
  0x2a   : > { %1187 = vmatprep.subr.mxu1 %v551_v22  ;;  %1156 = vmatprep.mubr.msk.f32.mxu0 %vm305_vm0, %v290_v24 }
  0x2b   : > { %1188 = vmatpush3.msra.mxu1 %v551_v22  ;;  %1227 = vmatprep.subr.mxu0 %v775_v37 }
  0x2c   : > { %1189 = vmatprep.subr.mxu1 %v550_v30  ;;  %1228 = vmatpush3.msra.mxu0 %v775_v37 }
  0x2d   : > { %1157 = vmatmul.mubr.msk.f32.gmra.mxu0 %vm305_vm0, %v291_v25  ;;  %1190 = vmatpush3.msra.mxu1 %v550_v30 }
  0x2e   : > { %1159 = vmatprep.mubr.msk.f32.mxu0 %vm305_vm0, %v292_v26  ;;  %1191 = vmatprep.subr.mxu1 %v549_v31 }
  0x2f   : > { %1192 = vmatpush3.msra.mxu1 %v549_v31  ;;  %1229 = vmatprep.subr.mxu0 %v774_v38 }
  0x30   : > { %1193 = vmatprep.subr.mxu1 %v548_v32  ;;  %1230 = vmatpush3.msra.mxu0 %v774_v38 }
  0x31   : > { %1160 = vmatmul.mubr.msk.f32.gmra.mxu0 %vm305_vm0, %v293_v27  ;;  %1194 = vmatpush3.msra.mxu1 %v548_v32 }
  0x32   : > { %1162 = vmatprep.mubr.msk.f32.mxu0 %vm305_vm0, %v294_v28  ;;  %1195 = vmatprep.subr.mxu1 %v547_v33 }
  0x33   : > { %1196 = vmatpush3.msra.mxu1 %v547_v33  ;;  %1231 = vmatprep.subr.mxu0 %v773_v39 }
  0x34   : > { %1232 = vmatpush3.msra.mxu0 %v773_v39 }
  0x35   : > { %1163 = vmatmul.mubr.msk.f32.gmra.mxu0 %vm305_vm0, %v295_v29  ;;  %1233 = vmatprep.subr.mxu0 %v772_v40 }
  0x36   : > { %1234 = vmatpush3.msra.mxu0 %v772_v40 }
  0x37   : > { %1235 = vmatprep.subr.mxu0 %v771_v41 }
  0x38   : > { %1236 = vmatpush3.msra.mxu0 %v771_v41 }
  0x39   : > { %1237 = vmatprep.subr.mxu0 %v770_v42 }
  0x3a   : > { %1238 = vmatpush3.msra.mxu0 %v770_v42 }
  0x3b   : > { %1239 = vmatprep.subr.mxu0 %v769_v43 }
  0x3c   : > { %1240 = vmatpush3.msra.mxu0 %v769_v43 }
  0x3d   : > { %1241 = vmatprep.subr.mxu0 %v768_v44 }
  0x3e   : > { %1242 = vmatpush3.msra.mxu0 %v768_v44 }
  0x3f   : > { %1243 = vmatprep.subr.mxu0 %v767_v45 }
  0x40   : > { %1244 = vmatpush3.msra.mxu0 %v767_v45 }
  0xd9   : > { %v1143_v47 = vpop.f32.mrf.mxu0 }
  0xda   : > { %v426_v48 = vadd.f32 %v1143_v47, %v1602_v46 }
  0xdb   : > { %v420_v49 = vpop.f32.mrf.mxu0 }
  0xdc   : > { %v421_v50 = vadd.f32 %v1602_v46, %v420_v49  ;;  %v516_v51 = vmul.f32 0.01, %v426_v48  ;;  %vm500_vm2 = vcmp.gt.f32.partialorder %v426_v48, 0.0  ;;  %v764_v49 = vld [vmem:[%s1733_s5 + $0x8] sm:$0xff] }
  0xdd   : > { %v1146_v52 = vpop.f32.mrf.mxu0 }
  0xde   : > { %v436_v53 = vadd.f32 %v1146_v52, %v1602_v46  ;;  %vm499_vm1 = vcmp.gt.f32.partialorder %v421_v50, 0.0  ;;  %v515_v54 = vmul.f32 0.01, %v421_v50  ;;  %v532_v60 = vsel %vm500_vm2, %v426_v48, %v516_v51  ;;  %v766_v48 = vld [vmem:[%s1733_s5 + $0x18] sm:$0xff]  ;;  %v1635_v51 = vld [vmem:[%s1732_s4] ss:$0 sm:$0xff] }
  0xdf   : > { %v430_v55 = vpop.f32.mrf.mxu0  ;;  %1245 = vmatprep.subr.mxu0 %v766_v48 }
  0xe0   : > { %v431_v56 = vadd.f32 %v1602_v46, %v430_v55  ;;  %v531_v57 = vsel %vm499_vm1, %v421_v50, %v515_v54  ;;  %v518_v58 = vmul.f32 0.01, %v436_v53  ;;  %vm502_vm4 = vcmp.gt.f32.partialorder %v436_v53, 0.0  ;;  %1246 = vmatpush3.msra.mxu0 %v766_v48  ;;  %v763_v50 = vld [vmem:[%s1733_s5] sm:$0xff] }
  0xe1   : > { %v1149_v59 = vpop.f32.mrf.mxu0  ;;  %1197 = vmatprep.mubr.f32.mxu1 %v531_v57 }
  0xe2   : > { %v517_v61 = vmul.f32 0.01, %v431_v56  ;;  %v446_v62 = vadd.f32 %v1149_v59, %v1602_v46  ;;  %1198 = vmatmul.mubr.f32.vlgmr.msra.gmra.mxu1 %v532_v60  ;;  %vm501_vm3 = vcmp.gt.f32.partialorder %v431_v56, 0.0  ;;  %v534_v4 = vsel %vm502_vm4, %v436_v53, %v518_v58 }
  0xe3   : > { %v440_v63 = vpop.f32.mrf.mxu0 }
  0xe4   : > { %v441_v0 = vadd.f32 %v1602_v46, %v440_v63  ;;  %v533_v1 = vsel %vm501_vm3, %v431_v56, %v517_v61  ;;  %v520_v2 = vmul.f32 0.01, %v446_v62  ;;  %vm504_vm6 = vcmp.gt.f32.partialorder %v446_v62, 0.0 }
  0xe5   : > { %v1152_v3 = vpop.f32.mrf.mxu0  ;;  %1200 = vmatprep.mubr.f32.mxu1 %v533_v1 }
  0xe6   : > { %v519_v5 = vmul.f32 0.01, %v441_v0  ;;  %v456_v6 = vadd.f32 %v1152_v3, %v1602_v46  ;;  %1201 = vmatmul.mubr.f32.gmra.mxu1 %v534_v4  ;;  %vm503_vm5 = vcmp.gt.f32.partialorder %v441_v0, 0.0  ;;  %v536_v12 = vsel %vm504_vm6, %v446_v62, %v520_v2 }
  0xe7   : > { %v450_v7 = vpop.f32.mrf.mxu0 }
  0xe8   : > { %v451_v8 = vadd.f32 %v1602_v46, %v450_v7  ;;  %v535_v9 = vsel %vm503_vm5, %v441_v0, %v519_v5  ;;  %v522_v10 = vmul.f32 0.01, %v456_v6  ;;  %vm506_vm8 = vcmp.gt.f32.partialorder %v456_v6, 0.0 }
  0xe9   : > { %v1155_v11 = vpop.f32.mrf.mxu0  ;;  %1203 = vmatprep.mubr.f32.mxu1 %v535_v9 }
  0xea   : > { %v521_v13 = vmul.f32 0.01, %v451_v8  ;;  %v466_v14 = vadd.f32 %v1155_v11, %v1602_v46  ;;  %1204 = vmatmul.mubr.f32.gmra.mxu1 %v536_v12  ;;  %vm505_vm7 = vcmp.gt.f32.partialorder %v451_v8, 0.0  ;;  %v538_v20 = vsel %vm506_vm8, %v456_v6, %v522_v10 }
  0xeb   : > { %v460_v15 = vpop.f32.mrf.mxu0 }
  0xec   : > { %v461_v16 = vadd.f32 %v1602_v46, %v460_v15  ;;  %v537_v17 = vsel %vm505_vm7, %v451_v8, %v521_v13  ;;  %v524_v18 = vmul.f32 0.01, %v466_v14  ;;  %vm508_vm10 = vcmp.gt.f32.partialorder %v466_v14, 0.0 }
  0xed   : > { %v1158_v19 = vpop.f32.mrf.mxu0  ;;  %1206 = vmatprep.mubr.f32.mxu1 %v537_v17 }
  0xee   : > { %v523_v21 = vmul.f32 0.01, %v461_v16  ;;  %v476_v22 = vadd.f32 %v1158_v19, %v1602_v46  ;;  %1207 = vmatmul.mubr.f32.gmra.mxu1 %v538_v20  ;;  %vm507_vm9 = vcmp.gt.f32.partialorder %v461_v16, 0.0  ;;  %v540_v28 = vsel %vm508_vm10, %v466_v14, %v524_v18 }
  0xef   : > { %v470_v23 = vpop.f32.mrf.mxu0 }
  0xf0   : > { %v471_v24 = vadd.f32 %v1602_v46, %v470_v23  ;;  %v539_v25 = vsel %vm507_vm9, %v461_v16, %v523_v21  ;;  %v526_v26 = vmul.f32 0.01, %v476_v22  ;;  %vm510_vm12 = vcmp.gt.f32.partialorder %v476_v22, 0.0 }
  0xf1   : > { %v1161_v27 = vpop.f32.mrf.mxu0  ;;  %1209 = vmatprep.mubr.f32.mxu1 %v539_v25 }
  0xf2   : > { %v525_v29 = vmul.f32 0.01, %v471_v24  ;;  %v486_v30 = vadd.f32 %v1161_v27, %v1602_v46  ;;  %1210 = vmatmul.mubr.f32.gmra.mxu1 %v540_v28  ;;  %vm509_vm11 = vcmp.gt.f32.partialorder %v471_v24, 0.0  ;;  %v542_v36 = vsel %vm510_vm12, %v476_v22, %v526_v26 }
  0xf3   : > { %v480_v31 = vpop.f32.mrf.mxu0 }
  0xf4   : > { %v481_v32 = vadd.f32 %v1602_v46, %v480_v31  ;;  %v541_v33 = vsel %vm509_vm11, %v471_v24, %v525_v29  ;;  %v528_v34 = vmul.f32 0.01, %v486_v30  ;;  %vm512_vm14 = vcmp.gt.f32.partialorder %v486_v30, 0.0 }
  0xf5   : > { %v1164_v35 = vpop.f32.mrf.mxu0  ;;  %1212 = vmatprep.mubr.f32.mxu1 %v541_v33 }
  0xf6   : > { %v527_v37 = vmul.f32 0.01, %v481_v32  ;;  %v496_v38 = vadd.f32 %v1164_v35, %v1602_v46  ;;  %1213 = vmatmul.mubr.f32.gmra.mxu1 %v542_v36  ;;  %vm511_vm13 = vcmp.gt.f32.partialorder %v481_v32, 0.0  ;;  %v544_v43 = vsel %vm512_vm14, %v486_v30, %v528_v34 }
  0xf7   : > { %v490_v39 = vpop.f32.mrf.mxu0 }
  0xf8   : > { %v491_v40 = vadd.f32 %v1602_v46, %v490_v39  ;;  %v543_v41 = vsel %vm511_vm13, %v481_v32, %v527_v37  ;;  %v530_v42 = vmul.f32 0.01, %v496_v38  ;;  %vm514_vm0 = vcmp.gt.f32.partialorder %v496_v38, 0.0  ;;  %v765_v46 = vld [vmem:[%s1733_s5 + $0x10] sm:$0xff] }
  0xf9   : > { %1215 = vmatprep.mubr.f32.mxu1 %v543_v41  ;;  %1247 = vmatprep.subr.mxu0 %v765_v46 }
  0xfa   : > { %v529_v44 = vmul.f32 0.01, %v491_v40  ;;  %1216 = vmatmul.mubr.f32.gmra.mxu1 %v544_v43  ;;  %vm513_vm15 = vcmp.gt.f32.partialorder %v491_v40, 0.0  ;;  %v546_v47 = vsel %vm514_vm0, %v496_v38, %v530_v42  ;;  %1248 = vmatpush3.msra.mxu0 %v765_v46 }
  0xfb   : > { %1249 = vmatprep.subr.mxu0 %v764_v49 }
  0xfc   : > { %v545_v45 = vsel %vm513_vm15, %v491_v40, %v529_v44  ;;  %1250 = vmatpush3.msra.mxu0 %v764_v49 }
  0xfd   : > { %1218 = vmatprep.mubr.f32.mxu1 %v545_v45  ;;  %1251 = vmatprep.subr.mxu0 %v763_v50 }
  0xfe   : > { %1219 = vmatmul.mubr.f32.gmra.mxu1 %v546_v47  ;;  %1252 = vmatpush3.msra.mxu0 %v763_v50 }
 0x1a2   : > { %v1199_v52 = vpop.f32.mrf.mxu1 }
 0x1a3   : > { %v642_v53 = vadd.f32 %v1199_v52, %v1635_v51 }
 0x1a4   : > { %v636_v54 = vpop.f32.mrf.mxu1 }
 0x1a5   : > { %v637_v55 = vadd.f32 %v1635_v51, %v636_v54  ;;  %v732_v56 = vmul.f32 0.01, %v642_v53  ;;  %vm716_vm1 = vcmp.gt.f32.partialorder %v642_v53, 0.0 }
 0x1a6   : > { %v1202_v57 = vpop.f32.mrf.mxu1 }
 0x1a7   : > { %v731_v58 = vmul.f32 0.01, %v637_v55  ;;  %v652_v59 = vadd.f32 %v1202_v57, %v1635_v51  ;;  %vm715_vm2 = vcmp.gt.f32.partialorder %v637_v55, 0.0  ;;  %v748_v63 = vsel %vm716_vm1, %v642_v53, %v732_v56  ;;  %v1048_v53 = vld [vmem:[%s1734_s6] ss:$0 sm:$0xff] }
 0x1a8   : > { %v646_v60 = vpop.f32.mrf.mxu1 }
 0x1a9   : > { %v647_v61 = vadd.f32 %v1635_v51, %v646_v60  ;;  %v747_v62 = vsel %vm715_vm2, %v637_v55, %v731_v58  ;;  %v734_v0 = vmul.f32 0.01, %v652_v59  ;;  %vm718_vm4 = vcmp.gt.f32.partialorder %v652_v59, 0.0 }
 0x1aa   : > { %v1205_v1 = vpop.f32.mrf.mxu1  ;;  %1253 = vmatprep.mubr.f32.mxu0 %v747_v62 }
 0x1ab   : > { %v733_v2 = vmul.f32 0.01, %v647_v61  ;;  %v662_v3 = vadd.f32 %v1205_v1, %v1635_v51  ;;  %1254 = vmatmul.mubr.f32.vlgmr.msra.gmra.mxu0 %v748_v63  ;;  %vm717_vm3 = vcmp.gt.f32.partialorder %v647_v61, 0.0  ;;  %v750_v9 = vsel %vm718_vm4, %v652_v59, %v734_v0 }
 0x1ac   : > { %v656_v4 = vpop.f32.mrf.mxu1 }
 0x1ad   : > { %v657_v5 = vadd.f32 %v1635_v51, %v656_v4  ;;  %v749_v6 = vsel %vm717_vm3, %v647_v61, %v733_v2  ;;  %v736_v7 = vmul.f32 0.01, %v662_v3  ;;  %vm720_vm6 = vcmp.gt.f32.partialorder %v662_v3, 0.0 }
 0x1ae   : > { %v1208_v8 = vpop.f32.mrf.mxu1  ;;  %1256 = vmatprep.mubr.f32.mxu0 %v749_v6 }
 0x1af   : > { %v735_v10 = vmul.f32 0.01, %v657_v5  ;;  %v672_v11 = vadd.f32 %v1208_v8, %v1635_v51  ;;  %1257 = vmatmul.mubr.f32.gmra.mxu0 %v750_v9  ;;  %vm719_vm5 = vcmp.gt.f32.partialorder %v657_v5, 0.0  ;;  %v752_v17 = vsel %vm720_vm6, %v662_v3, %v736_v7 }
 0x1b0   : > { %v666_v12 = vpop.f32.mrf.mxu1 }
 0x1b1   : > { %v667_v13 = vadd.f32 %v1635_v51, %v666_v12  ;;  %v751_v14 = vsel %vm719_vm5, %v657_v5, %v735_v10  ;;  %v738_v15 = vmul.f32 0.01, %v672_v11  ;;  %vm722_vm8 = vcmp.gt.f32.partialorder %v672_v11, 0.0 }
 0x1b2   : > { %v1211_v16 = vpop.f32.mrf.mxu1  ;;  %1259 = vmatprep.mubr.f32.mxu0 %v751_v14 }
 0x1b3   : > { %v737_v18 = vmul.f32 0.01, %v667_v13  ;;  %v682_v19 = vadd.f32 %v1211_v16, %v1635_v51  ;;  %1260 = vmatmul.mubr.f32.gmra.mxu0 %v752_v17  ;;  %vm721_vm7 = vcmp.gt.f32.partialorder %v667_v13, 0.0  ;;  %v754_v25 = vsel %vm722_vm8, %v672_v11, %v738_v15 }
 0x1b4   : > { %v676_v20 = vpop.f32.mrf.mxu1 }
 0x1b5   : > { %v677_v21 = vadd.f32 %v1635_v51, %v676_v20  ;;  %v753_v22 = vsel %vm721_vm7, %v667_v13, %v737_v18  ;;  %v740_v23 = vmul.f32 0.01, %v682_v19  ;;  %vm724_vm10 = vcmp.gt.f32.partialorder %v682_v19, 0.0 }
 0x1b6   : > { %v1214_v24 = vpop.f32.mrf.mxu1  ;;  %1262 = vmatprep.mubr.f32.mxu0 %v753_v22 }
 0x1b7   : > { %v739_v26 = vmul.f32 0.01, %v677_v21  ;;  %v692_v27 = vadd.f32 %v1214_v24, %v1635_v51  ;;  %1263 = vmatmul.mubr.f32.gmra.mxu0 %v754_v25  ;;  %vm723_vm9 = vcmp.gt.f32.partialorder %v677_v21, 0.0  ;;  %v756_v33 = vsel %vm724_vm10, %v682_v19, %v740_v23 }
 0x1b8   : > { %v686_v28 = vpop.f32.mrf.mxu1 }
 0x1b9   : > { %v687_v29 = vadd.f32 %v1635_v51, %v686_v28  ;;  %v755_v30 = vsel %vm723_vm9, %v677_v21, %v739_v26  ;;  %v742_v31 = vmul.f32 0.01, %v692_v27  ;;  %vm726_vm12 = vcmp.gt.f32.partialorder %v692_v27, 0.0 }
 0x1ba   : > { %v1217_v32 = vpop.f32.mrf.mxu1  ;;  %1265 = vmatprep.mubr.f32.mxu0 %v755_v30 }
 0x1bb   : > { %v741_v34 = vmul.f32 0.01, %v687_v29  ;;  %v702_v35 = vadd.f32 %v1217_v32, %v1635_v51  ;;  %1266 = vmatmul.mubr.f32.gmra.mxu0 %v756_v33  ;;  %vm725_vm11 = vcmp.gt.f32.partialorder %v687_v29, 0.0  ;;  %v758_v41 = vsel %vm726_vm12, %v692_v27, %v742_v31 }
 0x1bc   : > { %v696_v36 = vpop.f32.mrf.mxu1 }
 0x1bd   : > { %v697_v37 = vadd.f32 %v1635_v51, %v696_v36  ;;  %v757_v38 = vsel %vm725_vm11, %v687_v29, %v741_v34  ;;  %v744_v39 = vmul.f32 0.01, %v702_v35  ;;  %vm728_vm14 = vcmp.gt.f32.partialorder %v702_v35, 0.0 }
 0x1be   : > { %v1220_v40 = vpop.f32.mrf.mxu1  ;;  %1268 = vmatprep.mubr.f32.mxu0 %v757_v38 }
 0x1bf   : > { %v743_v42 = vmul.f32 0.01, %v697_v37  ;;  %v712_v43 = vadd.f32 %v1220_v40, %v1635_v51  ;;  %1269 = vmatmul.mubr.f32.gmra.mxu0 %v758_v41  ;;  %vm727_vm13 = vcmp.gt.f32.partialorder %v697_v37, 0.0  ;;  %v760_v46 = vsel %vm728_vm14, %v702_v35, %v744_v39 }
 0x1c0   : > { %v706_v44 = vpop.f32.mrf.mxu1 }
 0x1c1   : > { %v707_v45 = vadd.f32 %v1635_v51, %v706_v44  ;;  %v759_v47 = vsel %vm727_vm13, %v697_v37, %v743_v42  ;;  %v746_v48 = vmul.f32 0.01, %v712_v43  ;;  %vm730_vm0 = vcmp.gt.f32.partialorder %v712_v43, 0.0 }
 0x1c2   : > { %1271 = vmatprep.mubr.f32.mxu0 %v759_v47 }
 0x1c3   : > { %v745_v49 = vmul.f32 0.01, %v707_v45  ;;  %1272 = vmatmul.mubr.f32.gmra.mxu0 %v760_v46  ;;  %vm729_vm15 = vcmp.gt.f32.partialorder %v707_v45, 0.0  ;;  %v762_v52 = vsel %vm730_vm0, %v712_v43, %v746_v48 }
 0x1c5   : > { %v761_v50 = vsel %vm729_vm15, %v707_v45, %v745_v49 }
 0x1c6   : > { %1274 = vmatprep.mubr.f32.mxu0 %v761_v50 }
 0x1c7   : > { %1275 = vmatmul.mubr.f32.gmra.mxu0 %v762_v52 }
 0x26b   : > { %v1255_v51 = vpop.f32.mrf.mxu0 }
 0x26c   : > { %v858_v54 = vadd.f32 %v1255_v51, %v1048_v53 }
 0x26d   : > { %v852_v55 = vpop.f32.mrf.mxu0 }
 0x26e   : > { %932 = vst [vmem:[%s1659_s15 + $0x8] sm:$0xff] %v858_v54  ;;  %v853_v56 = vadd.f32 %v1048_v53, %v852_v55 }
 0x26f   : > { %v1258_v57 = vpop.f32.mrf.mxu0 }
 0x270   : > { %931 = vst [vmem:[%s1659_s15] sm:$0xff] %v853_v56  ;;  %v868_v58 = vadd.f32 %v1258_v57, %v1048_v53 }
 0x271   : > { %v862_v59 = vpop.f32.mrf.mxu0 }
 0x272   : > { %934 = vst [vmem:[%s1659_s15 + $0x18] sm:$0xff] %v868_v58  ;;  %v863_v60 = vadd.f32 %v1048_v53, %v862_v59 }
 0x273   : > { %v1261_v61 = vpop.f32.mrf.mxu0 }
 0x274   : > { %933 = vst [vmem:[%s1659_s15 + $0x10] sm:$0xff] %v863_v60  ;;  %v878_v62 = vadd.f32 %v1261_v61, %v1048_v53 }
 0x275   : > { %v872_v63 = vpop.f32.mrf.mxu0 }
 0x276   : > { %936 = vst [vmem:[%s1659_s15 + $0x28] sm:$0xff] %v878_v62  ;;  %v873_v0 = vadd.f32 %v1048_v53, %v872_v63 }
 0x277   : > { %v1264_v1 = vpop.f32.mrf.mxu0 }
 0x278   : > { %935 = vst [vmem:[%s1659_s15 + $0x20] sm:$0xff] %v873_v0  ;;  %v888_v2 = vadd.f32 %v1264_v1, %v1048_v53 }
 0x279   : > { %v882_v3 = vpop.f32.mrf.mxu0 }
 0x27a   : > { %938 = vst [vmem:[%s1659_s15 + $0x38] sm:$0xff] %v888_v2  ;;  %v883_v4 = vadd.f32 %v1048_v53, %v882_v3 }
 0x27b   : > { %v1267_v5 = vpop.f32.mrf.mxu0 }
 0x27c   : > { %937 = vst [vmem:[%s1659_s15 + $0x30] sm:$0xff] %v883_v4  ;;  %v898_v6 = vadd.f32 %v1267_v5, %v1048_v53 }
 0x27d   : > { %v892_v7 = vpop.f32.mrf.mxu0 }
 0x27e   : > { %940 = vst [vmem:[%s1659_s15 + $0x48] sm:$0xff] %v898_v6  ;;  %v893_v8 = vadd.f32 %v1048_v53, %v892_v7 }
 0x27f   : > { %v1270_v9 = vpop.f32.mrf.mxu0 }
 0x280   : > { %939 = vst [vmem:[%s1659_s15 + $0x40] sm:$0xff] %v893_v8  ;;  %v908_v10 = vadd.f32 %v1270_v9, %v1048_v53 }
 0x281   : > { %v902_v11 = vpop.f32.mrf.mxu0 }
 0x282   : > { %942 = vst [vmem:[%s1659_s15 + $0x58] sm:$0xff] %v908_v10  ;;  %v903_v12 = vadd.f32 %v1048_v53, %v902_v11 }
 0x283   : > { %v1273_v13 = vpop.f32.mrf.mxu0 }
 0x284   : > { %941 = vst [vmem:[%s1659_s15 + $0x50] sm:$0xff] %v903_v12  ;;  %v918_v14 = vadd.f32 %v1273_v13, %v1048_v53 }
 0x285   : > { %v912_v15 = vpop.f32.mrf.mxu0 }
 0x286   : > { %944 = vst [vmem:[%s1659_s15 + $0x68] sm:$0xff] %v918_v14  ;;  %v913_v16 = vadd.f32 %v1048_v53, %v912_v15 }
 0x287   : > { %v1276_v17 = vpop.f32.mrf.mxu0 }
 0x288   : > { %943 = vst [vmem:[%s1659_s15 + $0x60] sm:$0xff] %v913_v16  ;;  %v928_v18 = vadd.f32 %v1276_v17, %v1048_v53 }
 0x289   : > { %v922_v19 = vpop.f32.mrf.mxu0 }
 0x28a   : > { %946 = vst [vmem:[%s1659_s15 + $0x78] sm:$0xff] %v928_v18  ;;  %v923_v20 = vadd.f32 %v1048_v53, %v922_v19 }
 0x28c   : > { %945 = vst [vmem:[%s1659_s15 + $0x70] sm:$0xff] %v923_v20 }
 0x28d   : > { %1331 = shalt.err (!%p1328_p3)
}
 0x28e   : > { %s1332_s21 = scalar_lea.hbm %s1680_s16, 2048  ;;  %s1336_s29 = scalar_lea.hbm %s1735_s7, 4096 }
 0x28f   : > { %p1333_p4 = scmp.ne.s32.totalorder %s1680_s16, %s1332_s21  ;;  %p1337_p9 = scmp.lt.s32.totalorder %s1680_s16, %s1735_s7 }
 0x290   : > { %p1338_p10 = scmp.lt.s32.totalorder %s1336_s29, %s1332_s21 }
 0x291   : > { %p1334_p7 = pnand %p1333_p4, %p1461_p5 }
 0x292   : > { %p1339_p11 = por %p1338_p10, %p1337_p9 }
 0x293   : > { %p1335_p8 = pneg %p1334_p7 }
 0x295   : > { %p1340_p12 = pnand %p1339_p11, %p1335_p8 }
 0x297   : > { %1343 = shalt.err (!%p1340_p12)
}
 0x298   : > { %s1381_s13 = smov 128   ;;  %s1382_s14 = smov 8  }
 0x299   : > { %1277 = dma.vmem_to_hbm [thread:$0]  (%p1461_p5), %s1682_s9, 2048, %s1680_s16, %s1688_s28, %s1381_s13, %s1381_s13, %s1382_s14  }
 0x29a PF: > { %p1283_p13 = scmp.ge.s32.totalorder %s1378_s27, 2  ;;  %s976_s18 = sand.u32 1, %s1366_s24  }
 0x29b   : > { %s977_s17 = scalar_lea.sflag [#allocation3], %s976_s18 }
 0x29c   : > { %p1280_p0 = pnand %p1283_p13, %p1465_p6 }
 0x29e   : > { %p1281_p1 = pneg %p1280_p0 }
 0x2a0   : > { %1361 = dma.done.wait (%p1281_p1), %s977_s17, 2048  }
 0x2a1   : > { %1363 = vsyncadd (%p1281_p1), %s977_s17, 4294965248  ;;  %p17_p2 = scmp.ge.s32.totalorder %s1448_s30, 4   ;;  %s1738_s24 = smov %s1370_s25 }
 0x2a2   : > { %s1739_s25 = smov %s1374_s26  ;;  %s1740_s26 = smov %s1459_s10 }
 0x2a3   : > { %s1741_s27 = smov %s1448_s30  ;;  %19 = sbr.rel (!%p17_p2) target bundleno = 3 (0x3), region = 83 }
 0x2a8   :  { %982 = vsyncpa [#allocation3], 1 }
 0x2a9   :  { %984 = vsyncpa [#allocation3 + $0x1], 1 }

</bundles_post_ra>
